<compile_context>
chip_gen: v7x
topology: tpu7x:2x2x1
jax: 0.10.0
libtpu: 0.0.40
codegen_flags: <defaults>
</compile_context>

<pallas_src>
import numpy as np
import jax
import jax.numpy as jnp
from jax import lax
from jax.experimental import pallas as pl
from jax.experimental.pallas import tpu as pltpu

EPS = 1e-5

# ----------------------------- config (small) -----------------------------
PREPROCESS_LAYER_NUM = 2
PREPROCESS_FILTER_NUM = 4
PREPROCESS_KERNEL_SIZE = 3
PREPROCESS_STRIDE = 2
INPUT_FEATURE = 32
D_MODEL = 32
BATCH = 2
SEQ_LEN = 8

K = PREPROCESS_KERNEL_SIZE
S = PREPROCESS_STRIDE
P = PREPROCESS_KERNEL_SIZE // 2


def _conv_out_len(f_in):
    return (f_in + 2 * P - K) // S + 1


def _pad8(n):
    return -(-n // 8) * 8


# ------------------------- deterministic parameters ------------------------
def init_params(key):
    """Raw parameters matching the nn.Module's __init__ shapes."""
    layers = []
    f = INPUT_FEATURE
    for i in range(PREPROCESS_LAYER_NUM):
        c_in = 1 if i == 0 else PREPROCESS_FILTER_NUM
        key, *ks = jax.random.split(key, 11)
        layer = dict(
            # depthwise Conv2d(c_in, c_in, (1,K), groups=c_in, bias=False): weight [c_in,1,1,K] -> keep [c_in,K]
            wd=jax.random.normal(ks[0], (c_in, K), jnp.float32) * 0.5,
            # BatchNorm2d(c_in)
            g1=jax.random.uniform(ks[1], (c_in,), jnp.float32, 0.5, 1.5),
            b1=jax.random.normal(ks[2], (c_in,), jnp.float32) * 0.1,
            m1=jax.random.normal(ks[3], (c_in,), jnp.float32) * 0.1,
            v1=jax.random.uniform(ks[4], (c_in,), jnp.float32, 0.5, 1.5),
            # pointwise Conv2d(c_in, c_out, 1x1, bias=False): weight [c_out,c_in,1,1] -> keep [c_out,c_in]
            wp=jax.random.normal(ks[5], (PREPROCESS_FILTER_NUM, c_in), jnp.float32) * 0.5,
            # BatchNorm2d(c_out)
            g2=jax.random.uniform(ks[6], (PREPROCESS_FILTER_NUM,), jnp.float32, 0.5, 1.5),
            b2=jax.random.normal(ks[7], (PREPROCESS_FILTER_NUM,), jnp.float32) * 0.1,
            m2=jax.random.normal(ks[8], (PREPROCESS_FILTER_NUM,), jnp.float32) * 0.1,
            v2=jax.random.uniform(ks[9], (PREPROCESS_FILTER_NUM,), jnp.float32, 0.5, 1.5),
        )
        layers.append(layer)
        f = _conv_out_len(f)
    conv_out_fea = PREPROCESS_FILTER_NUM * f
    key, k1, k2 = jax.random.split(key, 3)
    wlin = jax.random.normal(k1, (D_MODEL, conv_out_fea), jnp.float32) / np.sqrt(conv_out_fea)
    blin = jax.random.normal(k2, (D_MODEL,), jnp.float32) * 0.1
    return dict(layers=layers, wlin=wlin, blin=blin, conv_out_fea=conv_out_fea)


# --------------------- host-side parameter setup (glue) --------------------
def _conv1d_matrix(w, f_in):
    """Dense [F_in, F_out] matrix for a 1-D cross-correlation (stride S, pad P)."""
    f_out = _conv_out_len(f_in)
    m = np.zeros((f_in, f_out), np.float32)
    for j in range(f_out):
        for k in range(K):
            i = j * S + k - P
            if 0 <= i < f_in:
                m[i, j] += w[k]
    return m


def build_kernel_params(raw):
    """Fold BN into the matmuls and pack everything into a single f32 slab.

    Slab layout (all offsets static Python ints, recorded in `meta`):
      * each weight matrix at an 8-aligned sublane offset, lane offset 0
      * one 8-row block at the end holding all bias/shift/blin rows.
    """
    folded = []
    f_in = INPUT_FEATURE
    for layer in raw["layers"]:
        wd = np.asarray(layer["wd"], np.float32)
        wp = np.asarray(layer["wp"], np.float32)
        c_in = wd.shape[0]
        f_out = _conv_out_len(f_in)

        # block-diagonal depthwise conv matrix: [c_in*f_in, c_in*f_out]
        dmat = np.zeros((c_in * f_in, c_in * f_out), np.float32)
        for c in range(c_in):
            dmat[c * f_in:(c + 1) * f_in, c * f_out:(c + 1) * f_out] = _conv1d_matrix(wd[c], f_in)

        # BN1 inference affine (per c_in channel), expanded channel-major over f_out
        s1 = np.asarray(layer["g1"], np.float32) / np.sqrt(np.asarray(layer["v1"], np.float32) + EPS)
        sh1 = np.asarray(layer["b1"], np.float32) - np.asarray(layer["m1"], np.float32) * s1
        s1e = np.repeat(s1, f_out).astype(np.float32)
        sh1e = np.repeat(sh1, f_out).astype(np.float32)

        # pointwise 1x1 conv as kron(Wp^T, I_F): [c_in*f_out, c_out*f_out]
        pmat = np.kron(wp.T, np.eye(f_out, dtype=np.float32)).astype(np.float32)

        # BN2 inference affine (per c_out channel)
        s2 = np.asarray(layer["g2"], np.float32) / np.sqrt(np.asarray(layer["v2"], np.float32) + EPS)
        sh2 = np.asarray(layer["b2"], np.float32) - np.asarray(layer["m2"], np.float32) * s2
        s2e = np.repeat(s2, f_out).astype(np.float32)
        sh2e = np.repeat(sh2, f_out).astype(np.float32)

        # fold BN1 (pre-matmul affine) into pmat, and BN2 scale through the ReLU
        # (ReLU(x)*s2 == ReLU(x*s2) requires s2 > 0; true for gamma, var > 0)
        assert np.all(s2 > 0), "BN2 scale fold through ReLU requires positive gamma"
        pmat_f = (s1e[:, None] * pmat * s2e[None, :]).astype(np.float32)
        bias_f = ((sh1e @ pmat) * s2e).astype(np.float32)

        folded.append(dict(dmat=dmat, pmat=pmat_f, bias=bias_f, shift=sh2e))
        f_in = f_out

    wlin_t = np.asarray(raw["wlin"], np.float32).T          # [conv_out_fea, D_MODEL]
    blin = np.asarray(raw["blin"], np.float32)

    all_mats = []
    for fl in folded:
        all_mats += [fl["dmat"], fl["pmat"]]
    all_mats.append(wlin_t)
    all_vecs = []
    for fl in folded:
        all_vecs += [fl["bias"], fl["shift"]]
    all_vecs.append(blin)

    slab_w = max([m.shape[1] for m in all_mats] + [v.shape[0] for v in all_vecs])
    mat_rows = sum(_pad8(m.shape[0]) for m in all_mats)
    vec_rows = _pad8(len(all_vecs))
    slab = np.zeros((mat_rows + vec_rows, slab_w), np.float32)

    mat_offs = []
    row = 0
    for m in all_mats:
        slab[row:row + m.shape[0], :m.shape[1]] = m
        mat_offs.append((row, m.shape[0], m.shape[1]))
        row += _pad8(m.shape[0])
    vec_base = mat_rows
    for i, v in enumerate(all_vecs):
        slab[vec_base + i, :v.shape[0]] = v

    layers_meta = []
    for li in range(len(folded)):
        d_off, d_rows, d_cols = mat_offs[2 * li]
        p_off, p_rows, p_cols = mat_offs[2 * li + 1]
        layers_meta.append(dict(d_off=d_off, d_rows=d_rows, d_cols=d_cols,
                                p_off=p_off, p_rows=p_rows, p_cols=p_cols,
                                bias_idx=2 * li, shift_idx=2 * li + 1))
    lin_off, lin_rows, lin_cols = mat_offs[-1]
    meta = dict(layers=layers_meta,
                lin_off=lin_off, lin_rows=lin_rows, lin_cols=lin_cols,
                blin_idx=len(all_vecs) - 1,
                vec_base=vec_base, vec_rows=vec_rows,
                matmul_kn=[(m.shape[0], m.shape[1]) for m in all_mats])
    return jnp.asarray(slab, jnp.float32), meta


# ------------------------------ Pallas kernel ------------------------------
def make_kernel(meta):
    HIGHEST = lax.Precision.HIGHEST

    def kernel(x_ref, slab_ref, out_ref):
        h = x_ref[...].astype(jnp.float32)
        # one load of the small bias/shift block; per-row slices below are value slices
        vecs = slab_ref[meta["vec_base"]:meta["vec_base"] + meta["vec_rows"], :]
        for lm in meta["layers"]:
            dmat = slab_ref[lm["d_off"]:lm["d_off"] + lm["d_rows"], :lm["d_cols"]]
            pmat = slab_ref[lm["p_off"]:lm["p_off"] + lm["p_rows"], :lm["p_cols"]]
            bias = vecs[lm["bias_idx"]:lm["bias_idx"] + 1, :lm["p_cols"]]
            shift = vecs[lm["shift_idx"]:lm["shift_idx"] + 1, :lm["p_cols"]]
            # depthwise conv (block-diag matmul) + ReLU
            h = jnp.maximum(
                jnp.dot(h, dmat, precision=HIGHEST, preferred_element_type=jnp.float32), 0.0)
            # pointwise 1x1 conv with BN1 + BN2-scale folded in, bias, ReLU
            h = jnp.maximum(
                jnp.dot(h, pmat, precision=HIGHEST, preferred_element_type=jnp.float32) + bias,
                0.0)
            # residual BN2 shift + outer ReLU
            h = jnp.maximum(h + shift, 0.0)
        wlin = slab_ref[meta["lin_off"]:meta["lin_off"] + meta["lin_rows"], :meta["lin_cols"]]
        blin = vecs[meta["blin_idx"]:meta["blin_idx"] + 1, :meta["lin_cols"]]
        # final Linear + ReLU (dropout == identity at inference)
        h = jnp.maximum(
            jnp.dot(h, wlin, precision=HIGHEST, preferred_element_type=jnp.float32) + blin, 0.0)
        out_ref[...] = h.astype(out_ref.dtype)

    return kernel


def preprocess_conv_pallas(x, slab, meta):
    B, L, F0 = x.shape
    N = B * L
    x2 = x.reshape(N, F0)                       # free row-major view
    out2 = (N, D_MODEL)

    flops = 2 * sum(N * k * n for (k, n) in meta["matmul_kn"])
    bytes_accessed = 4 * (x2.size + slab.size + N * D_MODEL)

    out = pl.pallas_call(
        make_kernel(meta),
        out_shape=jax.ShapeDtypeStruct(out2, x.dtype),
        grid_spec=pltpu.PrefetchScalarGridSpec(
            num_scalar_prefetch=0,
            grid=(1,),                                          # single grid step
            in_specs=[pl.BlockSpec(x2.shape, lambda i: (0, 0)),
                      pl.BlockSpec(slab.shape, lambda i: (0, 0))],
            out_specs=pl.BlockSpec(out2, lambda i: (0, 0)),
        ),
        compiler_params=pltpu.CompilerParams(dimension_semantics=("arbitrary",)),
        cost_estimate=pl.CostEstimate(flops=flops, transcendentals=0,
                                      bytes_accessed=bytes_accessed),
    )(x2, slab)
    return out.reshape(B, L, D_MODEL)


# ------------------------- pure-JAX reference (NCHW) ------------------------
def reference_forward(x, raw):
    B, L, _ = x.shape
    h = x[:, None, :, :]  # [B, 1, L, F]
    for layer in raw["layers"]:
        c_in = layer["wd"].shape[0]
        w_dw = layer["wd"][:, None, None, :]          # OIHW, groups=c_in
        h = lax.conv_general_dilated(
            h, w_dw, window_strides=(1, S), padding=((0, 0), (P, P)),
            dimension_numbers=("NCHW", "OIHW", "NCHW"),
            feature_group_count=c_in, precision=lax.Precision.HIGHEST)
        h = jnp.maximum(h, 0.0)
        h = ((h - layer["m1"][None, :, None, None])
             / jnp.sqrt(layer["v1"][None, :, None, None] + EPS)
             * layer["g1"][None, :, None, None] + layer["b1"][None, :, None, None])
        w_pw = layer["wp"][:, :, None, None]
        h = lax.conv_general_dilated(
            h, w_pw, window_strides=(1, 1), padding=((0, 0), (0, 0)),
            dimension_numbers=("NCHW", "OIHW", "NCHW"),
            precision=lax.Precision.HIGHEST)
        h = jnp.maximum(h, 0.0)
        h = ((h - layer["m2"][None, :, None, None])
             / jnp.sqrt(layer["v2"][None, :, None, None] + EPS)
             * layer["g2"][None, :, None, None] + layer["b2"][None, :, None, None])
        h = jnp.maximum(h, 0.0)
    h = jnp.transpose(h, (0, 2, 1, 3)).reshape(B, L, -1)      # [B, L, C*F']
    h = jnp.maximum(jnp.dot(h, raw["wlin"].T, precision=lax.Precision.HIGHEST)
                    + raw["blin"], 0.0)
    return h


# ---------------------------------- main -----------------------------------
if __name__ == "__main__":
    key = jax.random.PRNGKey(0)
    key, kx = jax.random.split(key)
    x = jax.random.normal(kx, (BATCH, SEQ_LEN, INPUT_FEATURE), jnp.float32)

    raw = init_params(key)
    slab, meta = build_kernel_params(raw)

    out = jax.block_until_ready(preprocess_conv_pallas(x, slab, meta))
    assert out.shape == (BATCH, SEQ_LEN, D_MODEL), out.shape

    ref = jax.block_until_ready(reference_forward(x, raw))
    # Full-precision MXU path restored -> tight tolerance against the f32 reference.
    np.testing.assert_allclose(np.asarray(out), np.asarray(ref), rtol=1e-4, atol=1e-4)

    print("KERNEL_OK")
</pallas_src>

<mosaic_0001>
module attributes {stable_mosaic.version = 11 : i64} {
  func.func @kernel(%arg0: i32, %arg1: memref<16x32xf32, #tpu.memory_space<vmem>>, %arg2: memref<184x64xf32, #tpu.memory_space<vmem>>, %arg3: memref<16x32xf32, #tpu.memory_space<vmem>>) attributes {dimension_semantics = [#tpu.dimension_semantics<arbitrary>], iteration_bounds = array<i64: 1>, scalar_prefetch = 0 : i64, scratch_operands = 0 : i64, tpu.core_type = #tpu.core_type<tc>, window_params = [{pipeline_mode = #tpu.pipeline_mode<synchronous>, transform_indices = @transform_0, window_bounds = array<i64: 16, 32>}, {pipeline_mode = #tpu.pipeline_mode<synchronous>, transform_indices = @transform_1, window_bounds = array<i64: 184, 64>}, {pipeline_mode = #tpu.pipeline_mode<synchronous>, transform_indices = @transform_2, window_bounds = array<i64: 16, 32>}]} {
    %c0 = arith.constant 0 : index
    %c0_0 = arith.constant 0 : index
    %0 = vector.load %arg1[%c0, %c0_0] : memref<16x32xf32, #tpu.memory_space<vmem>>, vector<16x32xf32>
    %c176 = arith.constant 176 : index
    %c0_1 = arith.constant 0 : index
    %1 = vector.load %arg2[%c176, %c0_1] : memref<184x64xf32, #tpu.memory_space<vmem>>, vector<8x64xf32>
    %c0_2 = arith.constant 0 : index
    %c0_3 = arith.constant 0 : index
    %2 = vector.load %arg2[%c0_2, %c0_3] : memref<184x64xf32, #tpu.memory_space<vmem>>, vector<32x16xf32>
    %c32 = arith.constant 32 : index
    %c0_4 = arith.constant 0 : index
    %3 = vector.load %arg2[%c32, %c0_4] : memref<184x64xf32, #tpu.memory_space<vmem>>, vector<16x64xf32>
    %4 = vector.extract_strided_slice %1 {offsets = [0, 0], sizes = [1, 64], strides = [1, 1]} : vector<8x64xf32> to vector<1x64xf32>
    %5 = vector.extract_strided_slice %1 {offsets = [1, 0], sizes = [1, 64], strides = [1, 1]} : vector<8x64xf32> to vector<1x64xf32>
    %cst = arith.constant dense<0.000000e+00> : vector<16x16xf32>
    %6 = tpu.matmul %0, %2, %cst {dimension_numbers = #tpu.dot_dimension_numbers<[1], [0], [0], [1], [0, 0, 1, 1], [], []>, precision = #tpu.contract_precision<fp32>} : vector<16x32xf32>, vector<32x16xf32>, vector<16x16xf32> -> vector<16x16xf32>
    %cst_5 = arith.constant 0.000000e+00 : f32
    %7 = vector.broadcast %cst_5 : f32 to vector<16x16xf32>
    %8 = arith.maximumf %6, %7 : vector<16x16xf32>
    %cst_6 = arith.constant dense<0.000000e+00> : vector<16x64xf32>
    %9 = tpu.matmul %8, %3, %cst_6 {dimension_numbers = #tpu.dot_dimension_numbers<[1], [0], [0], [1], [0, 0, 1, 1], [], []>, precision = #tpu.contract_precision<fp32>} : vector<16x16xf32>, vector<16x64xf32>, vector<16x64xf32> -> vector<16x64xf32>
    %10 = vector.broadcast %4 : vector<1x64xf32> to vector<16x64xf32>
    %11 = arith.addf %9, %10 : vector<16x64xf32>
    %cst_7 = arith.constant 0.000000e+00 : f32
    %12 = vector.broadcast %cst_7 : f32 to vector<16x64xf32>
    %13 = arith.maximumf %11, %12 : vector<16x64xf32>
    %14 = vector.broadcast %5 : vector<1x64xf32> to vector<16x64xf32>
    %15 = arith.addf %13, %14 : vector<16x64xf32>
    %cst_8 = arith.constant 0.000000e+00 : f32
    %16 = vector.broadcast %cst_8 : f32 to vector<16x64xf32>
    %17 = arith.maximumf %15, %16 : vector<16x64xf32>
    %c48 = arith.constant 48 : index
    %c0_9 = arith.constant 0 : index
    %18 = vector.load %arg2[%c48, %c0_9] : memref<184x64xf32, #tpu.memory_space<vmem>>, vector<64x32xf32>
    %c112 = arith.constant 112 : index
    %c0_10 = arith.constant 0 : index
    %19 = vector.load %arg2[%c112, %c0_10] : memref<184x64xf32, #tpu.memory_space<vmem>>, vector<32x32xf32>
    %20 = vector.extract_strided_slice %1 {offsets = [2, 0], sizes = [1, 32], strides = [1, 1]} : vector<8x64xf32> to vector<1x32xf32>
    %21 = vector.extract_strided_slice %1 {offsets = [3, 0], sizes = [1, 32], strides = [1, 1]} : vector<8x64xf32> to vector<1x32xf32>
    %cst_11 = arith.constant dense<0.000000e+00> : vector<16x32xf32>
    %22 = tpu.matmul %17, %18, %cst_11 {dimension_numbers = #tpu.dot_dimension_numbers<[1], [0], [0], [1], [0, 0, 1, 1], [], []>, precision = #tpu.contract_precision<fp32>} : vector<16x64xf32>, vector<64x32xf32>, vector<16x32xf32> -> vector<16x32xf32>
    %cst_12 = arith.constant 0.000000e+00 : f32
    %23 = vector.broadcast %cst_12 : f32 to vector<16x32xf32>
    %24 = arith.maximumf %22, %23 : vector<16x32xf32>
    %cst_13 = arith.constant dense<0.000000e+00> : vector<16x32xf32>
    %25 = tpu.matmul %24, %19, %cst_13 {dimension_numbers = #tpu.dot_dimension_numbers<[1], [0], [0], [1], [0, 0, 1, 1], [], []>, precision = #tpu.contract_precision<fp32>} : vector<16x32xf32>, vector<32x32xf32>, vector<16x32xf32> -> vector<16x32xf32>
    %26 = vector.broadcast %20 : vector<1x32xf32> to vector<16x32xf32>
    %27 = arith.addf %25, %26 : vector<16x32xf32>
    %cst_14 = arith.constant 0.000000e+00 : f32
    %28 = vector.broadcast %cst_14 : f32 to vector<16x32xf32>
    %29 = arith.maximumf %27, %28 : vector<16x32xf32>
    %30 = vector.broadcast %21 : vector<1x32xf32> to vector<16x32xf32>
    %31 = arith.addf %29, %30 : vector<16x32xf32>
    %cst_15 = arith.constant 0.000000e+00 : f32
    %32 = vector.broadcast %cst_15 : f32 to vector<16x32xf32>
    %33 = arith.maximumf %31, %32 : vector<16x32xf32>
    %c144 = arith.constant 144 : index
    %c0_16 = arith.constant 0 : index
    %34 = vector.load %arg2[%c144, %c0_16] : memref<184x64xf32, #tpu.memory_space<vmem>>, vector<32x32xf32>
    %35 = vector.extract_strided_slice %1 {offsets = [4, 0], sizes = [1, 32], strides = [1, 1]} : vector<8x64xf32> to vector<1x32xf32>
    %cst_17 = arith.constant dense<0.000000e+00> : vector<16x32xf32>
    %36 = tpu.matmul %33, %34, %cst_17 {dimension_numbers = #tpu.dot_dimension_numbers<[1], [0], [0], [1], [0, 0, 1, 1], [], []>, precision = #tpu.contract_precision<fp32>} : vector<16x32xf32>, vector<32x32xf32>, vector<16x32xf32> -> vector<16x32xf32>
    %37 = vector.broadcast %35 : vector<1x32xf32> to vector<16x32xf32>
    %38 = arith.addf %36, %37 : vector<16x32xf32>
    %cst_18 = arith.constant 0.000000e+00 : f32
    %39 = vector.broadcast %cst_18 : f32 to vector<16x32xf32>
    %40 = arith.maximumf %38, %39 : vector<16x32xf32>
    %c0_19 = arith.constant 0 : index
    %c0_20 = arith.constant 0 : index
    %41 = vector.load %arg3[%c0_19, %c0_20] : memref<16x32xf32, #tpu.memory_space<vmem>>, vector<16x32xf32>
    tpu.vector_store %arg3[%c0_19, %c0_20], %40 {strides = array<i32>} : memref<16x32xf32, #tpu.memory_space<vmem>>, vector<16x32xf32>,
    return
  }
  func.func @transform_0(%arg0: i32) -> (i32, i32) {
    %c0_i32 = arith.constant 0 : i32
    %c0_i32_0 = arith.constant 0 : i32
    %c0_i32_1 = arith.constant 0 : i32
    return %c0_i32, %c0_i32_0 : i32, i32
  }
  func.func @transform_1(%arg0: i32) -> (i32, i32) {
    %c0_i32 = arith.constant 0 : i32
    %c0_i32_0 = arith.constant 0 : i32
    %c0_i32_1 = arith.constant 0 : i32
    return %c0_i32, %c0_i32_0 : i32, i32
  }
  func.func @transform_2(%arg0: i32) -> (i32, i32) {
    %c0_i32 = arith.constant 0 : i32
    %c0_i32_0 = arith.constant 0 : i32
    %c0_i32_1 = arith.constant 0 : i32
    return %c0_i32, %c0_i32_0 : i32, i32
  }
}

</mosaic_0001>

<bundles_post_ra>
// kernel: tpu_custom_call.1
= control target key start
LH: loop header
LB: loop body
LE: loop exit
PB: predicated region body
PF: predicated region fallthrough
CT: control target
= control target key end

     0   :  { %vm21_vm0 = vcmask 261120   ;;  %s3904_s0 = inlined_call_operand.vmem [shape: f32[16,32], index: 0, kind: input, shape index: {}]   ;;  %s3905_s1 = inlined_call_operand.vmem [shape: f32[184,64], index: 1, kind: input, shape index: {}]   ;;  %s3906_s2 = inlined_call_operand.hbm [shape: f32[16,32], index: 2, kind: output, shape index: {}]  }
   0x1   :  { %v15_v0 = vld [vmem:[%s3905_s1] sm:$0xff]  ;;  %v16_v1 = vld [vmem:[%s3905_s1 + $0x8] sm:$0xff]  ;;  %v17_v2 = vld [vmem:[%s3905_s1 + $0x10] sm:$0xff] }
   0x2   :  { %v29_v3 = vand.u32 4294901760, %v15_v0  ;;  %v32_v4 = vand.u32 4294901760, %v16_v1  ;;  %v18_v5 = vld [vmem:[%s3905_s1 + $0x18] sm:$0xff]  ;;  %v35_v6 = vand.u32 4294901760, %v17_v2  ;;  %v12_v7 = vld [vmem:[%s3904_s0] sm:$0xff]  ;;  %v13_v8 = vld [vmem:[%s3904_s0 + $0x8] sm:$0xff] }
   0x3   :  { %v38_v9 = vand.u32 4294901760, %v18_v5  ;;  %v23_v10 = vsel %vm21_vm0, %v12_v7, 0  ;;  %v26_v11 = vsel %vm21_vm0, %v13_v8, 0 }
   0x4   :  { %7 = vsyncpa [#allocation3], 0  ;;  %v3723_v12 = vpack.c.bf16 %v32_v4, %v29_v3  ;;  %v119_v13 = vsub.f32 %v15_v0, %v29_v3  ;;  %v126_v14 = vsub.f32 %v16_v1, %v32_v4  ;;  %v133_v15 = vsub.f32 %v17_v2, %v35_v6  ;;  %v19_v46 = vld [vmem:[%s3905_s1 + $0x20] sm:$0xff]  ;;  %v20_v47 = vld [vmem:[%s3905_s1 + $0x28] sm:$0xff] }
   0x5   :  { %v140_v16 = vsub.f32 %v18_v5, %v38_v9  ;;  %v97_v17 = vand.u32 4294901760, %v23_v10  ;;  %v107_v18 = vand.u32 4294901760, %v26_v11  ;;  %v3342_v21 = vpack.c.bf16 %v38_v9, %v35_v6 }
   0x6   :  { %v120_v19 = vand.u32 4294901760, %v119_v13  ;;  %v127_v20 = vand.u32 4294901760, %v126_v14  ;;  %v134_v22 = vand.u32 4294901760, %v133_v15  ;;  %3339 = vmatprep.subr.bf16.mxu1 %v3723_v12  ;;  %v3354_v42 = vpack.c.bf16 %v126_v14, %v119_v13 }
   0x7   :  { %v141_v23 = vand.u32 4294901760, %v140_v16  ;;  %3003 = vmatprep.mubr.f32.mxu0 %v97_v17  ;;  %v98_v24 = vsub.f32 %v23_v10, %v97_v17  ;;  %v108_v25 = vsub.f32 %v26_v11, %v107_v18  ;;  %3341 = vmatpush3.bf16.msra.mxu1 %v3723_v12  ;;  %v3358_v43 = vpack.c.bf16 %v140_v16, %v133_v15 }
   0x8   :  { %v121_v26 = vsub.f32 %v119_v13, %v120_v19  ;;  %v128_v27 = vsub.f32 %v126_v14, %v127_v20  ;;  %v135_v28 = vsub.f32 %v133_v15, %v134_v22  ;;  %3343 = vmatprep.subr.bf16.mxu1 %v3342_v21  ;;  %v3370_v44 = vpack.c.bf16 %v127_v20, %v120_v19  ;;  %v1082_v19 = vld [vmem:[%s3905_s1 + $0x38] sm:$0xff] }
   0x9   :  { %v142_v29 = vsub.f32 %v140_v16, %v141_v23  ;;  %v99_v30 = vand.u32 4294901760, %v98_v24  ;;  %v109_v31 = vand.u32 4294901760, %v108_v25  ;;  %v3374_v45 = vpack.c.bf16 %v141_v23, %v134_v22  ;;  %v1083_v23 = vld [vmem:[%s3905_s1 + $0x40] sm:$0xff] }
   0xa   :  { %v122_v32 = vand.u32 4294901760, %v121_v26  ;;  %v129_v33 = vand.u32 4294901760, %v128_v27  ;;  %v136_v34 = vand.u32 4294901760, %v135_v28  ;;  %v570_v48 = vand.u32 4294901760, %v19_v46  ;;  %v1085_v28 = vld [vmem:[%s3905_s1 + $0x50] sm:$0xff] }
   0xb   :  { %v143_v35 = vand.u32 4294901760, %v142_v29  ;;  %3345 = vmatpush3.bf16.msra.mxu1 %v3342_v21  ;;  %v100_v36 = vsub.f32 %v98_v24, %v99_v30  ;;  %v110_v37 = vsub.f32 %v108_v25, %v109_v31  ;;  %v573_v49 = vand.u32 4294901760, %v20_v47  ;;  %v1086_v29 = vld [vmem:[%s3905_s1 + $0x58] sm:$0xff] }
   0xc   :  { %v3346_v38 = vpack.c.bf16 %v129_v33, %v122_v32  ;;  %v658_v51 = vsub.f32 %v19_v46, %v570_v48  ;;  %vm562_vm1 = vcmask 130048   ;;  %vm1093_vm2 = vcmask 523264  }
   0xd   :  { %v3350_v39 = vpack.c.bf16 %v143_v35, %v136_v34  ;;  %v101_v40 = vand.u32 4294901760, %v100_v36  ;;  %v111_v41 = vand.u32 4294901760, %v110_v37  ;;  %v3386_v50 = vpack.c.bf16 %v573_v49, %v570_v48  ;;  %v1087_v35 = vld [vmem:[%s3905_s1 + $0x60] sm:$0xff]  ;;  %v1088_v36 = vld [vmem:[%s3905_s1 + $0x68] sm:$0xff] }
   0xe   :  { %3347 = vmatprep.subr.bf16.mxu0 %v3346_v38  ;;  %v665_v52 = vsub.f32 %v20_v47, %v573_v49  ;;  %v659_v53 = vand.u32 4294901760, %v658_v51  ;;  %v1119_v37 = vand.u32 4294901760, %v1087_v35 }
   0xf   :  { %3349 = vmatpush3.bf16.msra.mxu0 %v3346_v38  ;;  %2992 = vmatprep.mubr.f32.mxu1 %v101_v40  ;;  %v1122_v38 = vand.u32 4294901760, %v1088_v36 }
  0x10   :  { %3351 = vmatprep.subr.bf16.mxu0 %v3350_v39  ;;  %2993 = vmatmul.mubr.f32.vlgmr.msra.gmra.mrb[0].mxu1 %v111_v41  ;;  %v666_v54 = vand.u32 4294901760, %v665_v52  ;;  %v660_v55 = vsub.f32 %v658_v51, %v659_v53  ;;  %v3394_v60 = vpack.c.bf16 %v665_v52, %v658_v51 }
  0x11   :  { %3387 = vmatprep.subr.bf16.mxu1 %v3386_v50  ;;  %v3773_v41 = vpack.c.bf16 %v1122_v38, %v1119_v37 }
  0x12   :  { %3389 = vmatpush3.bf16.msra.mxu1 %v3386_v50  ;;  %v667_v56 = vsub.f32 %v665_v52, %v666_v54  ;;  %v661_v57 = vand.u32 4294901760, %v660_v55  ;;  %v3402_v61 = vpack.c.bf16 %v666_v54, %v659_v53 }
  0x13   :  { %3353 = vmatpush3.bf16.msra.mxu0 %v3350_v39 }
  0x14   :  { %3355 = vmatprep.subr.bf16.mxu0 %v3354_v42  ;;  %v668_v58 = vand.u32 4294901760, %v667_v56 }
  0x16   :  { %3004 = vmatmul.mubr.f32.vlgmr.msra.gmra.mrb[0].mxu0 %v107_v18  ;;  %v3390_v59 = vpack.c.bf16 %v668_v58, %v661_v57 }
  0x17   :  { %3357 = vmatpush3.bf16.msra.mxu0 %v3354_v42  ;;  %3014 = vmatprep.mubr.f32.mxu0 %v98_v24  ;;  %v1084_v24 = vld [vmem:[%s3905_s1 + $0x48] sm:$0xff] }
  0x18   :  { %3359 = vmatprep.subr.bf16.mxu0 %v3358_v43  ;;  %3391 = vmatprep.subr.bf16.mxu1 %v3390_v59  ;;  %v1110_v26 = vand.u32 4294901760, %v1084_v24 }
  0x1b   :  { %3361 = vmatpush3.bf16.msra.mxu0 %v3358_v43 }
  0x1c   :  { %3363 = vmatprep.subr.bf16.mxu0 %v3723_v12 }
  0x1e   :  { %3015 = vmatmul.mubr.f32.vlgmr.msra.gmra.mrb[0].mxu0 %v108_v25  ;;  %v1107_v25 = vand.u32 4294901760, %v1083_v23 }
  0x1f   :  { %3365 = vmatpush3.bf16.msra.mxu0 %v3723_v12  ;;  %3025 = vmatprep.mubr.f32.mxu0 %v99_v30  ;;  %v1113_v30 = vand.u32 4294901760, %v1085_v28 }
  0x20   :  { %3367 = vmatprep.subr.bf16.mxu0 %v3342_v21  ;;  %v3753_v27 = vpack.c.bf16 %v1110_v26, %v1107_v25 }
  0x21   :  { %v1223_v53 = vsub.f32 %v1085_v28, %v1113_v30 }
  0x23   :  { %3369 = vmatpush3.bf16.msra.mxu0 %v3342_v21  ;;  %v1224_v57 = vand.u32 4294901760, %v1223_v53 }
  0x24   :  { %3371 = vmatprep.subr.bf16.mxu0 %v3370_v44 }
  0x26   :  { %3026 = vmatmul.mubr.f32.vlgmr.msra.gmra.mrb[0].mxu0 %v109_v31  ;;  %v1116_v31 = vand.u32 4294901760, %v1086_v29 }
  0x27   :  { %3373 = vmatpush3.bf16.msra.mxu0 %v3370_v44  ;;  %3036 = vmatprep.mubr.f32.mxu0 %v97_v17  ;;  %v1209_v44 = vsub.f32 %v1083_v23, %v1107_v25 }
  0x28   :  { %3375 = vmatprep.subr.bf16.mxu0 %v3374_v45  ;;  %v3763_v32 = vpack.c.bf16 %v1116_v31, %v1113_v30  ;;  %v1230_v54 = vsub.f32 %v1086_v29, %v1116_v31 }
  0x29   :  { %v1210_v48 = vand.u32 4294901760, %v1209_v44 }
  0x2a   :  { %v1231_v58 = vand.u32 4294901760, %v1230_v54 }
  0x2b   :  { %3377 = vmatpush3.bf16.msra.mxu0 %v3374_v45  ;;  %v1216_v45 = vsub.f32 %v1084_v24, %v1110_v26  ;;  %v1211_v51 = vsub.f32 %v1209_v44, %v1210_v48 }
  0x2c   :  { %3379 = vmatprep.subr.bf16.mxu0 %v3723_v12 }
  0x2d   :  { %v1217_v49 = vand.u32 4294901760, %v1216_v45  ;;  %v1212_v55 = vand.u32 4294901760, %v1211_v51 }
  0x2e   :  { %3037 = vmatmul.mubr.f32.vlgmr.msra.gmra.mrb[0].mxu0 %v107_v18 }
  0x2f   :  { %3381 = vmatpush3.bf16.msra.mxu0 %v3723_v12  ;;  %3047 = vmatprep.mubr.f32.mxu0 %v97_v17  ;;  %v1218_v52 = vsub.f32 %v1216_v45, %v1217_v49 }
  0x30   :  { %3383 = vmatprep.subr.bf16.mxu0 %v3342_v21 }
  0x31   :  { %v1219_v56 = vand.u32 4294901760, %v1218_v52 }
  0x33   :  { %3385 = vmatpush3.bf16.msra.mxu0 %v3342_v21  ;;  %v1104_v21 = vand.u32 4294901760, %v1082_v19 }
  0x35   :  { %v1202_v34 = vsub.f32 %v1082_v19, %v1104_v21 }
  0x36   :  { %3048 = vmatmul.mubr.f32.vlgmr.msra.gmra.mrb[0].mxu0 %v107_v18  ;;  %v1081_v18 = vld [vmem:[%s3905_s1 + $0x30] sm:$0xff] }
  0x37   :  { %v1101_v20 = vand.u32 4294901760, %v1081_v18  ;;  %v1203_v40 = vand.u32 4294901760, %v1202_v34 }
  0x39   :  { %v3743_v22 = vpack.c.bf16 %v1104_v21, %v1101_v20  ;;  %v1195_v33 = vsub.f32 %v1081_v18, %v1101_v20  ;;  %v1204_v43 = vsub.f32 %v1202_v34, %v1203_v40  ;;  %v558_v18 = vlaneseq  ;;  %v3794_v21 = vld [vmem:[%s3905_s1 + $0xb0] sm:$0xff] }
  0x3b   :  { %v1196_v39 = vand.u32 4294901760, %v1195_v33  ;;  %v1205_v47 = vand.u32 4294901760, %v1204_v43  ;;  %v3788_v19 = vshrl.u32 %v558_v18, 7 }
  0x3d   :  { %v1197_v42 = vsub.f32 %v1195_v33, %v1196_v39  ;;  %v560_v20 = vsub.s32 0, %v3788_v19  ;;  %v1075_v24 = vsub.s32 1, %v3788_v19 }
  0x3f   :  { %v1198_v46 = vand.u32 4294901760, %v1197_v42  ;;  %v561_v23 = vrot.slane %v3794_v21, %v560_v20  ;;  %v1076_v28 = vrot.slane %v3794_v21, %v1075_v24 }
  0xe3   :  { %v2994_v62 = vpop.f32.mrb[0].mxu1 }
  0xe4   :  { %v103_v63 = vpop.f32.mrb[1].mxu1 }
 0x109   :  { %v3049_v0 = vpop.f32.mrb[0].mxu0 }
 0x10a   :  { %v3602_v1 = vadd.f32 %v3049_v0, %v2994_v62  ;;  %v546_v2 = vpop.f32.mrb[1].mxu0  ;;  %v1237_v62 = vsub.f32 %v1087_v35, %v1119_v37 }
 0x10b   :  { %v3603_v3 = vadd.f32 %v546_v2, %v103_v63  ;;  %v1244_v63 = vsub.f32 %v1088_v36, %v1122_v38 }
 0x10c   :  { %v557_v4 = vmax.f32 %v3602_v1, 0.0  ;;  %v1238_v2 = vand.u32 4294901760, %v1237_v62 }
 0x10d   :  { %v556_v5 = vmax.f32 %v3603_v3, 0.0  ;;  %v1245_v3 = vand.u32 4294901760, %v1244_v63 }
 0x10e   :  { %v567_v6 = vsel %vm562_vm1, %v557_v4, 0 }
 0x10f   :  { %v646_v7 = vand.u32 4294901760, %v567_v6  ;;  %v564_v8 = vsel %vm562_vm1, %v556_v5, 0  ;;  %v1239_v5 = vsub.f32 %v1237_v62, %v1238_v2 }
 0x110   :  { %v636_v9 = vand.u32 4294901760, %v564_v8 }
 0x111   :  { %v647_v10 = vsub.f32 %v567_v6, %v646_v7  ;;  %v1246_v6 = vsub.f32 %v1244_v63, %v1245_v3 }
 0x112   :  { %v637_v11 = vsub.f32 %v564_v8, %v636_v9 }
 0x113   :  { %v648_v12 = vand.u32 4294901760, %v647_v10  ;;  %v1247_v8 = vand.u32 4294901760, %v1246_v6 }
 0x114   :  { %v638_v13 = vand.u32 4294901760, %v637_v11 }
 0x115   :  { %v649_v14 = vsub.f32 %v647_v10, %v648_v12 }
 0x116   :  { %v639_v15 = vsub.f32 %v637_v11, %v638_v13 }
 0x117   :  { %v650_v17 = vand.u32 4294901760, %v649_v14  ;;  %v3780_v14 = vpack.c.bf16 %v1203_v40, %v1196_v39 }
 0x118   :  { %v640_v16 = vand.u32 4294901760, %v639_v15  ;;  %v3782_v15 = vpack.c.bf16 %v1217_v49, %v1210_v48 }
 0x11a   :  { %3054 = vmatprep.mubr.f32.mxu1 %v640_v16  ;;  %v3784_v16 = vpack.c.bf16 %v1231_v58, %v1224_v57 }
 0x11b   :  { %3055 = vmatmul.mubr.f32.vlgmr.msra.gmra.mrb[2].mxu1 %v650_v17  ;;  %v3786_v17 = vpack.c.bf16 %v1245_v3, %v1238_v2 }
 0x11c   :  { %3393 = vmatpush3.bf16.msra.mxu1 %v3390_v59  ;;  %3061 = vmatprep.mubr.f32.mxu1 %v636_v9  ;;  %v3430_v59 = vpack.c.bf16 %v1219_v56, %v1212_v55 }
 0x11d   :  { %3395 = vmatprep.subr.bf16.mxu1 %v3394_v60 }
 0x123   :  { %3062 = vmatmul.mubr.f32.vlgmr.msra.gmra.mrb[2].mxu1 %v646_v7 }
 0x124   :  { %3397 = vmatpush3.bf16.msra.mxu1 %v3394_v60  ;;  %3068 = vmatprep.mubr.f32.mxu1 %v637_v11  ;;  %v1225_v60 = vsub.f32 %v1223_v53, %v1224_v57  ;;  %v3446_v11 = vpack.c.bf16 %v1216_v45, %v1209_v44 }
 0x125   :  { %3399 = vmatprep.subr.bf16.mxu1 %v3386_v50 }
 0x126   :  { %v1226_v0 = vand.u32 4294901760, %v1225_v60 }
 0x12b   :  { %3069 = vmatmul.mubr.f32.vlgmr.msra.gmra.mrb[2].mxu1 %v647_v10  ;;  %v3442_v10 = vpack.c.bf16 %v1202_v34, %v1195_v33 }
 0x12c   :  { %3401 = vmatpush3.bf16.msra.mxu1 %v3386_v50  ;;  %3075 = vmatprep.mubr.f32.mxu1 %v638_v13  ;;  %v3454_v13 = vpack.c.bf16 %v1244_v63, %v1237_v62 }
 0x12d   :  { %3403 = vmatprep.subr.bf16.mxu1 %v3402_v61 }
 0x133   :  { %3076 = vmatmul.mubr.f32.vlgmr.msra.gmra.mrb[2].mxu1 %v648_v12  ;;  %v3450_v12 = vpack.c.bf16 %v1230_v54, %v1223_v53 }
 0x134   :  { %3405 = vmatpush3.bf16.msra.mxu1 %v3402_v61  ;;  %3082 = vmatprep.mubr.f32.mxu1 %v636_v9  ;;  %v1232_v61 = vsub.f32 %v1230_v54, %v1231_v58 }
 0x135   :  { %3407 = vmatprep.subr.bf16.mxu1 %v3386_v50 }
 0x136   :  { %v1233_v1 = vand.u32 4294901760, %v1232_v61 }
 0x138   :  { %v3434_v4 = vpack.c.bf16 %v1233_v1, %v1226_v0 }
 0x13b   :  { %3083 = vmatmul.mubr.f32.vlgmr.msra.gmra.mrb[2].mxu1 %v646_v7 }
 0x13c   :  { %3409 = vmatpush3.bf16.msra.mxu1 %v3386_v50  ;;  %3089 = vmatprep.mubr.f32.mxu1 %v636_v9  ;;  %v3777_v50 = vpack.c.bf16 %v1205_v47, %v1198_v46 }
 0x13d   :  { %3411 = vmatprep.subr.bf16.mxu1 %v3743_v22 }
 0x143   :  { %3090 = vmatmul.mubr.f32.vlgmr.msra.gmra.mrb[2].mxu1 %v646_v7  ;;  %v1240_v7 = vand.u32 4294901760, %v1239_v5 }
 0x144   :  { %3413 = vmatpush3.bf16.msra.mxu1 %v3743_v22 }
 0x145   :  { %3415 = vmatprep.subr.bf16.mxu1 %v3753_v27  ;;  %v3438_v9 = vpack.c.bf16 %v1247_v8, %v1240_v7 }
 0x148   :  { %3417 = vmatpush3.bf16.msra.mxu1 %v3753_v27 }
 0x149   :  { %3419 = vmatprep.subr.bf16.mxu1 %v3763_v32 }
 0x14c   :  { %3421 = vmatpush3.bf16.msra.mxu1 %v3763_v32 }
 0x14d   :  { %3423 = vmatprep.subr.bf16.mxu1 %v3773_v41 }
 0x150   :  { %3425 = vmatpush3.bf16.msra.mxu1 %v3773_v41 }
 0x151   :  { %3427 = vmatprep.subr.bf16.mxu1 %v3777_v50 }
 0x216   :  { %v3091_v25 = vpop.f32.mrb[2].mxu1 }
 0x217   :  { %v3604_v26 = vadd.f32 %v3091_v25, %v561_v23  ;;  %v1061_v29 = vpop.f32.mrb[3].mxu1 }
 0x218   :  { %v3605_v30 = vadd.f32 %v1061_v29, %v561_v23 }
 0x219   :  { %v1072_v31 = vmax.f32 %v3604_v26, 0.0 }
 0x21a   :  { %v1071_v33 = vmax.f32 %v3605_v30, 0.0 }
 0x21b   :  { %v1078_v34 = vadd.f32 %v1076_v28, %v1072_v31 }
 0x21c   :  { %v1077_v35 = vadd.f32 %v1076_v28, %v1071_v33 }
 0x21d   :  { %v1080_v36 = vmax.f32 %v1078_v34, 0.0 }
 0x21e   :  { %v1079_v37 = vmax.f32 %v1077_v35, 0.0 }
 0x21f   :  { %v1098_v38 = vsel %vm1093_vm2, %v1080_v36, 0  ;;  %v2230_v36 = vld [vmem:[%s3905_s1 + $0x90] sm:$0xff] }
 0x220   :  { %v1183_v39 = vand.u32 4294901760, %v1098_v38  ;;  %v1095_v40 = vsel %vm1093_vm2, %v1079_v37, 0  ;;  %v2231_v37 = vld [vmem:[%s3905_s1 + $0x98] sm:$0xff] }
 0x221   :  { %v1173_v42 = vand.u32 4294901760, %v1095_v40 }
 0x222   :  { %v1184_v43 = vsub.f32 %v1098_v38, %v1183_v39  ;;  %v2245_v38 = vand.u32 4294901760, %v2230_v36 }
 0x223   :  { %v1174_v44 = vsub.f32 %v1095_v40, %v1173_v42 }
 0x224   :  { %v1185_v45 = vand.u32 4294901760, %v1184_v43 }
 0x225   :  { %v1175_v46 = vand.u32 4294901760, %v1174_v44 }
 0x226   :  { %v1186_v47 = vsub.f32 %v1184_v43, %v1185_v45 }
 0x227   :  { %v1176_v48 = vsub.f32 %v1174_v44, %v1175_v46 }
 0x228   :  { %v1187_v51 = vand.u32 4294901760, %v1186_v47 }
 0x229   :  { %v1177_v49 = vand.u32 4294901760, %v1176_v48 }
 0x22b   :  { %3108 = vmatprep.mubr.f32.mxu1 %v1177_v49 }
 0x22c   :  { %3109 = vmatmul.mubr.f32.vlgmr.msra.gmra.mrb[4].mxu1 %v1187_v51 }
 0x22d   :  { %3429 = vmatpush3.bf16.msra.mxu1 %v3777_v50  ;;  %3127 = vmatprep.mubr.f32.mxu1 %v1173_v42  ;;  %v1089_v50 = vld [vmem:[%s3905_s1 + $0x70] sm:$0xff] }
 0x22e   :  { %3431 = vmatprep.subr.bf16.mxu1 %v3430_v59  ;;  %v1693_v52 = vand.u32 4294901760, %v1089_v50 }
 0x230   :  { %v1783_v54 = vsub.f32 %v1089_v50, %v1693_v52 }
 0x231   :  { %3433 = vmatpush3.bf16.msra.mxu1 %v3430_v59 }
 0x232   :  { %3435 = vmatprep.subr.bf16.mxu1 %v3434_v4  ;;  %v1784_v58 = vand.u32 4294901760, %v1783_v54 }
 0x234   :  { %v1785_v61 = vsub.f32 %v1783_v54, %v1784_v58 }
 0x235   :  { %3437 = vmatpush3.bf16.msra.mxu1 %v3434_v4 }
 0x236   :  { %3439 = vmatprep.subr.bf16.mxu1 %v3438_v9  ;;  %v1786_v1 = vand.u32 4294901760, %v1785_v61 }
 0x239   :  { %3441 = vmatpush3.bf16.msra.mxu1 %v3438_v9 }
 0x23a   :  { %3443 = vmatprep.subr.bf16.mxu1 %v3442_v10 }
 0x23c   :  { %3128 = vmatmul.mubr.f32.vlgmr.msra.gmra.mrb[4].mxu1 %v1183_v39 }
 0x23d   :  { %3445 = vmatpush3.bf16.msra.mxu1 %v3442_v10  ;;  %3146 = vmatprep.mubr.f32.mxu1 %v1174_v44  ;;  %v2232_v44 = vld [vmem:[%s3905_s1 + $0xa0] sm:$0xff] }
 0x23e   :  { %3447 = vmatprep.subr.bf16.mxu1 %v3446_v11 }
 0x241   :  { %3449 = vmatpush3.bf16.msra.mxu1 %v3446_v11 }
 0x242   :  { %3451 = vmatprep.subr.bf16.mxu1 %v3450_v12 }
 0x245   :  { %3453 = vmatpush3.bf16.msra.mxu1 %v3450_v12 }
 0x246   :  { %3455 = vmatprep.subr.bf16.mxu1 %v3454_v13 }
 0x249   :  { %3457 = vmatpush3.bf16.msra.mxu1 %v3454_v13 }
 0x24a   :  { %3459 = vmatprep.subr.bf16.mxu1 %v3743_v22 }
 0x24c   :  { %3147 = vmatmul.mubr.f32.vlgmr.msra.gmra.mrb[4].mxu1 %v1184_v43 }
 0x24d   :  { %3461 = vmatpush3.bf16.msra.mxu1 %v3743_v22  ;;  %3165 = vmatprep.mubr.f32.mxu1 %v1175_v46  ;;  %v2251_v46 = vand.u32 4294901760, %v2232_v44 }
 0x24e   :  { %3463 = vmatprep.subr.bf16.mxu1 %v3753_v27 }
 0x251   :  { %3465 = vmatpush3.bf16.msra.mxu1 %v3753_v27 }
 0x252   :  { %3467 = vmatprep.subr.bf16.mxu1 %v3763_v32 }
 0x255   :  { %3469 = vmatpush3.bf16.msra.mxu1 %v3763_v32 }
 0x256   :  { %3471 = vmatprep.subr.bf16.mxu1 %v3773_v41 }
 0x259   :  { %3473 = vmatpush3.bf16.msra.mxu1 %v3773_v41 }
 0x25a   :  { %3475 = vmatprep.subr.bf16.mxu1 %v3780_v14 }
 0x25c   :  { %3166 = vmatmul.mubr.f32.vlgmr.msra.gmra.mrb[4].mxu1 %v1185_v45  ;;  %v2233_v45 = vld [vmem:[%s3905_s1 + $0xa8] sm:$0xff] }
 0x25d   :  { %3477 = vmatpush3.bf16.msra.mxu1 %v3780_v14  ;;  %3184 = vmatprep.mubr.f32.mxu1 %v1173_v42  ;;  %v2254_v47 = vand.u32 4294901760, %v2233_v45 }
 0x25e   :  { %3479 = vmatprep.subr.bf16.mxu1 %v3782_v15 }
 0x25f   :  { %v3870_v51 = vpack.c.bf16 %v2254_v47, %v2251_v46 }
 0x261   :  { %3481 = vmatpush3.bf16.msra.mxu1 %v3782_v15 }
 0x262   :  { %3483 = vmatprep.subr.bf16.mxu1 %v3784_v16 }
 0x265   :  { %3485 = vmatpush3.bf16.msra.mxu1 %v3784_v16 }
 0x266   :  { %3487 = vmatprep.subr.bf16.mxu1 %v3786_v17 }
 0x269   :  { %3489 = vmatpush3.bf16.msra.mxu1 %v3786_v17 }
 0x26a   :  { %3491 = vmatprep.subr.bf16.mxu1 %v3743_v22 }
 0x26c   :  { %3185 = vmatmul.mubr.f32.vlgmr.msra.gmra.mrb[4].mxu1 %v1183_v39 }
 0x26d   :  { %3493 = vmatpush3.bf16.msra.mxu1 %v3743_v22  ;;  %3203 = vmatprep.mubr.f32.mxu1 %v1173_v42  ;;  %v1090_v22 = vld [vmem:[%s3905_s1 + $0x78] sm:$0xff]  ;;  %v2335_v42 = vsub.f32 %v2230_v36, %v2245_v38 }
 0x26e   :  { %3495 = vmatprep.subr.bf16.mxu1 %v3753_v27  ;;  %v1696_v53 = vand.u32 4294901760, %v1090_v22 }
 0x26f   :  { %v2336_v48 = vand.u32 4294901760, %v2335_v42 }
 0x270   :  { %v1790_v55 = vsub.f32 %v1090_v22, %v1696_v53 }
 0x271   :  { %3497 = vmatpush3.bf16.msra.mxu1 %v3753_v27  ;;  %v3830_v27 = vpack.c.bf16 %v1696_v53, %v1693_v52  ;;  %v2337_v50 = vsub.f32 %v2335_v42, %v2336_v48  ;;  %v2349_v52 = vsub.f32 %v2232_v44, %v2251_v46  ;;  %v2356_v53 = vsub.f32 %v2233_v45, %v2254_v47 }
 0x272   :  { %3499 = vmatprep.subr.bf16.mxu1 %v3763_v32  ;;  %v1791_v59 = vand.u32 4294901760, %v1790_v55  ;;  %v3522_v11 = vpack.c.bf16 %v1790_v55, %v1783_v54 }
 0x273   :  { %3507 = vmatprep.subr.bf16.mxu0 %v3830_v27 }
 0x274   :  { %3509 = vmatpush3.bf16.msra.mxu0 %v3830_v27  ;;  %v1792_v62 = vsub.f32 %v1790_v55, %v1791_v59  ;;  %v3538_v13 = vpack.c.bf16 %v1791_v59, %v1784_v58  ;;  %v2350_v55 = vand.u32 4294901760, %v2349_v52 }
 0x275   :  { %3501 = vmatpush3.bf16.msra.mxu1 %v3763_v32  ;;  %v1091_v32 = vld [vmem:[%s3905_s1 + $0x80] sm:$0xff] }
 0x276   :  { %3503 = vmatprep.subr.bf16.mxu1 %v3773_v41  ;;  %v1699_v56 = vand.u32 4294901760, %v1091_v32  ;;  %v1793_v2 = vand.u32 4294901760, %v1792_v62  ;;  %v3574_v62 = vpack.c.bf16 %v2356_v53, %v2349_v52 }
 0x278   :  { %v1797_v63 = vsub.f32 %v1091_v32, %v1699_v56  ;;  %v3514_v5 = vpack.c.bf16 %v1793_v2, %v1786_v1  ;;  %v2357_v32 = vand.u32 4294901760, %v2356_v53  ;;  %v1684_v1 = vsub.s32 2, %v3788_v19 }
 0x279   :  { %3505 = vmatpush3.bf16.msra.mxu1 %v3773_v41  ;;  %v1092_v41 = vld [vmem:[%s3905_s1 + $0x88] sm:$0xff]  ;;  %s3685_s1 = smov [#allocation2]  }
 0x27a   :  { %v1702_v57 = vand.u32 4294901760, %v1092_v41  ;;  %v1798_v3 = vand.u32 4294901760, %v1797_v63  ;;  %v1685_v2 = vrot.slane %v3794_v21, %v1684_v1  ;;  %s2781_s29 = sshll.u32 %s3685_s1, 4  ;;  %s2782_s29 = int_to_ptr.vmem [resolvable:$true] %s2781_s29 }
 0x27b   :  { %s3661_s30 = scalar_lea.vmem %s2782_s29, 256  ;;  %p3666_p1 = scmp.lt.s32.totalorder %s2782_s29, %s2782_s29 }
 0x27c   :  { %3204 = vmatmul.mubr.f32.vlgmr.msra.gmra.mrb[4].mxu1 %v1183_v39  ;;  %v3840_v60 = vpack.c.bf16 %v1702_v57, %v1699_v56  ;;  %v1804_v0 = vsub.f32 %v1092_v41, %v1702_v57  ;;  %v1799_v6 = vsub.f32 %v1797_v63, %v1798_v3  ;;  %v2248_v39 = vand.u32 4294901760, %v2231_v37  ;;  %p3662_p0 = scmp.ne.s32.totalorder %s2782_s29, %s3661_s30  ;;  %p3667_p2 = scmp.lt.s32.totalorder %s3661_s30, %s3661_s30 }
 0x27d   :  { %v2351_v56 = vsub.f32 %v2349_v52, %v2350_v55  ;;  %v2358_v57 = vsub.f32 %v2356_v53, %v2357_v32 }
 0x27e   :  { %3511 = vmatprep.subr.bf16.mxu0 %v3840_v60  ;;  %v1805_v4 = vand.u32 4294901760, %v1804_v0  ;;  %v1800_v8 = vand.u32 4294901760, %v1799_v6  ;;  %v3526_v12 = vpack.c.bf16 %v1804_v0, %v1797_v63  ;;  %v3860_v40 = vpack.c.bf16 %v2248_v39, %v2245_v38  ;;  %p3668_p3 = por %p3667_p2, %p3666_p1 }
 0x27f   :  { %3513 = vmatpush3.bf16.msra.mxu0 %v3840_v60  ;;  %v2342_v43 = vsub.f32 %v2231_v37, %v2248_v39  ;;  %v2352_v58 = vand.u32 4294901760, %v2351_v56  ;;  %v2359_v59 = vand.u32 4294901760, %v2358_v57 }
 0x280   :  { %v1806_v7 = vsub.f32 %v1804_v0, %v1805_v4  ;;  %3515 = vmatprep.subr.bf16.mxu0 %v3514_v5  ;;  %v3542_v14 = vpack.c.bf16 %v1805_v4, %v1798_v3  ;;  %v3590_v0 = vpack.c.bf16 %v2357_v32, %v2350_v55  ;;  %v2224_v3 = vsub.s32 3, %v3788_v19  ;;  %p3669_p4 = pnand %p3668_p3, %p3662_p0 }
 0x281   :  { %v2343_v49 = vand.u32 4294901760, %v2342_v43  ;;  %v3570_v61 = vpack.c.bf16 %v2342_v43, %v2335_v42 }
 0x282   :  { %v1807_v9 = vand.u32 4294901760, %v1806_v7  ;;  %v2225_v6 = vrot.slane %v3794_v21, %v2224_v3 }
 0x283   :  { %v2344_v22 = vsub.f32 %v2342_v43, %v2343_v49  ;;  %v3586_v63 = vpack.c.bf16 %v2343_v49, %v2336_v48 }
 0x284   :  { %v3518_v10 = vpack.c.bf16 %v1807_v9, %v1800_v8 }
 0x285   :  { %v2345_v54 = vand.u32 4294901760, %v2344_v22 }
 0x34f   :  { %v3205_v15 = vpop.f32.mrb[4].mxu1 }
 0x350   :  { %v1681_v16 = vmax.f32 %v3205_v15, 0.0  ;;  %v1670_v17 = vpop.f32.mrb[5].mxu1 }
 0x351   :  { %v1680_v18 = vmax.f32 %v1670_v17, 0.0 }
 0x352   :  { %v1690_v20 = vsel %vm21_vm0, %v1681_v16, 0 }
 0x353   :  { %v1771_v23 = vand.u32 4294901760, %v1690_v20  ;;  %v1687_v24 = vsel %vm21_vm0, %v1680_v18, 0 }
 0x354   :  { %v1761_v25 = vand.u32 4294901760, %v1687_v24 }
 0x355   :  { %v1772_v26 = vsub.f32 %v1690_v20, %v1771_v23 }
 0x356   :  { %v1762_v28 = vsub.f32 %v1687_v24, %v1761_v25 }
 0x357   :  { %v1773_v29 = vand.u32 4294901760, %v1772_v26 }
 0x358   :  { %v1763_v30 = vand.u32 4294901760, %v1762_v28 }
 0x359   :  { %v1774_v31 = vsub.f32 %v1772_v26, %v1773_v29 }
 0x35a   :  { %v1764_v33 = vsub.f32 %v1762_v28, %v1763_v30 }
 0x35b   :  { %v1775_v35 = vand.u32 4294901760, %v1774_v31  ;;  %v2236_v31 = vsub.s32 4, %v3788_v19 }
 0x35c   :  { %v1765_v34 = vand.u32 4294901760, %v1764_v33 }
 0x35d   :  { %v2237_v33 = vrot.slane %v3794_v21, %v2236_v31 }
 0x35e   :  { %3214 = vmatprep.mubr.f32.mxu0 %v1765_v34 }
 0x35f   :  { %3215 = vmatmul.mubr.f32.vlgmr.msra.gmra.mrb[2].mxu0 %v1775_v35 }
 0x360   :  { %3517 = vmatpush3.bf16.msra.mxu0 %v3514_v5  ;;  %3225 = vmatprep.mubr.f32.mxu0 %v1761_v25 }
 0x361   :  { %3519 = vmatprep.subr.bf16.mxu0 %v3518_v10 }
 0x364   :  { %3521 = vmatpush3.bf16.msra.mxu0 %v3518_v10 }
 0x365   :  { %3523 = vmatprep.subr.bf16.mxu0 %v3522_v11 }
 0x367   :  { %3226 = vmatmul.mubr.f32.vlgmr.msra.gmra.mrb[2].mxu0 %v1771_v23 }
 0x368   :  { %3525 = vmatpush3.bf16.msra.mxu0 %v3522_v11  ;;  %3236 = vmatprep.mubr.f32.mxu0 %v1762_v28 }
 0x369   :  { %3527 = vmatprep.subr.bf16.mxu0 %v3526_v12 }
 0x36c   :  { %3529 = vmatpush3.bf16.msra.mxu0 %v3526_v12 }
 0x36d   :  { %3531 = vmatprep.subr.bf16.mxu0 %v3830_v27 }
 0x36f   :  { %3237 = vmatmul.mubr.f32.vlgmr.msra.gmra.mrb[2].mxu0 %v1772_v26 }
 0x370   :  { %3533 = vmatpush3.bf16.msra.mxu0 %v3830_v27  ;;  %3247 = vmatprep.mubr.f32.mxu0 %v1763_v30 }
 0x371   :  { %3535 = vmatprep.subr.bf16.mxu0 %v3840_v60 }
 0x374   :  { %3537 = vmatpush3.bf16.msra.mxu0 %v3840_v60 }
 0x375   :  { %3539 = vmatprep.subr.bf16.mxu0 %v3538_v13 }
 0x377   :  { %3248 = vmatmul.mubr.f32.vlgmr.msra.gmra.mrb[2].mxu0 %v1773_v29 }
 0x378   :  { %3541 = vmatpush3.bf16.msra.mxu0 %v3538_v13  ;;  %3258 = vmatprep.mubr.f32.mxu0 %v1761_v25 }
 0x379   :  { %3543 = vmatprep.subr.bf16.mxu0 %v3542_v14 }
 0x37c   :  { %3545 = vmatpush3.bf16.msra.mxu0 %v3542_v14 }
 0x37d   :  { %3547 = vmatprep.subr.bf16.mxu0 %v3830_v27 }
 0x37f   :  { %3259 = vmatmul.mubr.f32.vlgmr.msra.gmra.mrb[2].mxu0 %v1771_v23 }
 0x380   :  { %3549 = vmatpush3.bf16.msra.mxu0 %v3830_v27  ;;  %3269 = vmatprep.mubr.f32.mxu0 %v1761_v25  ;;  %v2338_v27 = vand.u32 4294901760, %v2337_v50 }
 0x381   :  { %3551 = vmatprep.subr.bf16.mxu0 %v3840_v60 }
 0x382   :  { %v3562_v41 = vpack.c.bf16 %v2345_v54, %v2338_v27 }
 0x384   :  { %3553 = vmatpush3.bf16.msra.mxu0 %v3840_v60  ;;  %v3566_v60 = vpack.c.bf16 %v2359_v59, %v2352_v58 }
 0x385   :  { %3555 = vmatprep.subr.bf16.mxu0 %v3860_v40 }
 0x387   :  { %3270 = vmatmul.mubr.f32.vlgmr.msra.gmra.mrb[2].mxu0 %v1771_v23 }
 0x388   :  { %3557 = vmatpush3.bf16.msra.mxu0 %v3860_v40 }
 0x389   :  { %3559 = vmatprep.subr.bf16.mxu0 %v3870_v51 }
 0x38c   :  { %3561 = vmatpush3.bf16.msra.mxu0 %v3870_v51 }
 0x38d   :  { %3563 = vmatprep.subr.bf16.mxu0 %v3562_v41 }
 0x45a   :  { %v3271_v4 = vpop.f32.mrb[2].mxu0 }
 0x45b   :  { %v3606_v5 = vadd.f32 %v3271_v4, %v1685_v2  ;;  %v2210_v7 = vpop.f32.mrb[3].mxu0 }
 0x45c   :  { %v3607_v8 = vadd.f32 %v2210_v7, %v1685_v2 }
 0x45d   :  { %v2221_v9 = vmax.f32 %v3606_v5, 0.0 }
 0x45e   :  { %v2220_v10 = vmax.f32 %v3607_v8, 0.0 }
 0x45f   :  { %v2227_v11 = vadd.f32 %v2225_v6, %v2221_v9 }
 0x460   :  { %v2226_v12 = vadd.f32 %v2225_v6, %v2220_v10 }
 0x461   :  { %v2229_v13 = vmax.f32 %v2227_v11, 0.0 }
 0x462   :  { %v2228_v14 = vmax.f32 %v2226_v12, 0.0 }
 0x463   :  { %v2242_v15 = vsel %vm21_vm0, %v2229_v13, 0 }
 0x464   :  { %v2323_v16 = vand.u32 4294901760, %v2242_v15  ;;  %v2239_v17 = vsel %vm21_vm0, %v2228_v14, 0 }
 0x465   :  { %v2313_v18 = vand.u32 4294901760, %v2239_v17 }
 0x466   :  { %v2324_v20 = vsub.f32 %v2242_v15, %v2323_v16 }
 0x467   :  { %v2314_v23 = vsub.f32 %v2239_v17, %v2313_v18 }
 0x468   :  { %v2325_v24 = vand.u32 4294901760, %v2324_v20 }
 0x469   :  { %v2315_v25 = vand.u32 4294901760, %v2314_v23 }
 0x46a   :  { %v2326_v26 = vsub.f32 %v2324_v20, %v2325_v24 }
 0x46b   :  { %v2316_v28 = vsub.f32 %v2314_v23, %v2315_v25 }
 0x46c   :  { %v2327_v30 = vand.u32 4294901760, %v2326_v26 }
 0x46d   :  { %v2317_v29 = vand.u32 4294901760, %v2316_v28 }
 0x46f   :  { %3280 = vmatprep.mubr.f32.mxu0 %v2317_v29 }
 0x470   :  { %3281 = vmatmul.mubr.f32.vlgmr.msra.gmra.mrb[4].mxu0 %v2327_v30 }
 0x471   :  { %3565 = vmatpush3.bf16.msra.mxu0 %v3562_v41  ;;  %3291 = vmatprep.mubr.f32.mxu0 %v2313_v18 }
 0x472   :  { %3567 = vmatprep.subr.bf16.mxu0 %v3566_v60 }
 0x475   :  { %3569 = vmatpush3.bf16.msra.mxu0 %v3566_v60 }
 0x476   :  { %3571 = vmatprep.subr.bf16.mxu0 %v3570_v61 }
 0x478   :  { %3292 = vmatmul.mubr.f32.vlgmr.msra.gmra.mrb[4].mxu0 %v2323_v16 }
 0x479   :  { %3573 = vmatpush3.bf16.msra.mxu0 %v3570_v61  ;;  %3302 = vmatprep.mubr.f32.mxu0 %v2314_v23 }
 0x47a   :  { %3575 = vmatprep.subr.bf16.mxu0 %v3574_v62 }
 0x47d   :  { %3577 = vmatpush3.bf16.msra.mxu0 %v3574_v62 }
 0x47e   :  { %3579 = vmatprep.subr.bf16.mxu0 %v3860_v40 }
 0x480   :  { %3303 = vmatmul.mubr.f32.vlgmr.msra.gmra.mrb[4].mxu0 %v2324_v20 }
 0x481   :  { %3581 = vmatpush3.bf16.msra.mxu0 %v3860_v40  ;;  %3313 = vmatprep.mubr.f32.mxu0 %v2315_v25 }
 0x482   :  { %3583 = vmatprep.subr.bf16.mxu0 %v3870_v51 }
 0x485   :  { %3585 = vmatpush3.bf16.msra.mxu0 %v3870_v51 }
 0x486   :  { %3587 = vmatprep.subr.bf16.mxu0 %v3586_v63 }
 0x488   :  { %3314 = vmatmul.mubr.f32.vlgmr.msra.gmra.mrb[4].mxu0 %v2325_v24 }
 0x489   :  { %3589 = vmatpush3.bf16.msra.mxu0 %v3586_v63  ;;  %3324 = vmatprep.mubr.f32.mxu0 %v2313_v18 }
 0x48a   :  { %3591 = vmatprep.subr.bf16.mxu0 %v3590_v0 }
 0x48d   :  { %3593 = vmatpush3.bf16.msra.mxu0 %v3590_v0 }
 0x48e   :  { %3595 = vmatprep.subr.bf16.mxu0 %v3860_v40 }
 0x490   :  { %3325 = vmatmul.mubr.f32.vlgmr.msra.gmra.mrb[4].mxu0 %v2323_v16 }
 0x491   :  { %3597 = vmatpush3.bf16.msra.mxu0 %v3860_v40  ;;  %3335 = vmatprep.mubr.f32.mxu0 %v2313_v18 }
 0x492   :  { %3599 = vmatprep.subr.bf16.mxu0 %v3870_v51 }
 0x495   :  { %3601 = vmatpush3.bf16.msra.mxu0 %v3870_v51 }
 0x498   :  { %3336 = vmatmul.mubr.f32.vlgmr.msra.gmra.mrb[4].mxu0 %v2323_v16 }
 0x56b   :  { %v3337_v34 = vpop.f32.mrb[4].mxu0 }
 0x56c   :  { %v3608_v35 = vadd.f32 %v3337_v34, %v2237_v33  ;;  %v2762_v36 = vpop.f32.mrb[5].mxu0 }
 0x56d   :  { %v3609_v37 = vadd.f32 %v2762_v36, %v2237_v33 }
 0x56e   :  { %v2773_v38 = vmax.f32 %v3608_v35, 0.0 }
 0x56f   :  { %v2772_v39 = vmax.f32 %v3609_v37, 0.0 }
 0x570   :  { %2775 = vst.msk [vmem:[#allocation2 + $0x8] sm:$0xff] %vm21_vm0, %v2773_v38 }
 0x571   :  { %2774 = vst.msk [vmem:[#allocation2] sm:$0xff] %vm21_vm0, %v2772_v39 }
 0x572   :  { %3672 = shalt.err (!%p3669_p4)
}
 0x573   :  { %s3673_s5 = scalar_lea.hbm %s3906_s2, 256 }
 0x574   :  { %p3674_p5 = scmp.ne.s32.totalorder %s3906_s2, %s3673_s5  ;;  %p3677_p6 = scmp.lt.u32.totalorder %s3673_s5, %s3906_s2 }
 0x576   :  { %p3679_p7 = pnand %p3677_p6, %p3674_p5 }
 0x578   :  { %3682 = shalt.err (!%p3679_p7)
}
 0x579   :  { %s3686_s10 = smov 128   ;;  %s3687_s11 = smov 8  }
 0x57a   :  { %2787 = dma.vmem_to_hbm [thread:$0]  %s2782_s29, 256, %s3906_s2, [#allocation3], %s3686_s10, %s3686_s10, %s3687_s11  }
 0x57b   :  { %3683 = dma.done.wait [#allocation3], 256  }
 0x57c   :  { %3684 = vsyncadd [#allocation3], 4294967040 }
 0x57d   :  { %2791 = vsyncpa [#allocation3], 1 }

</bundles_post_ra>
